<compile_context>
chip_gen: v5e
topology: v5e:2x2
jax: 0.10.0
libtpu: 0.0.40
codegen_flags: <defaults>
</compile_context>

<pallas_src>
import functools

import jax
import jax.numpy as jnp
from jax.experimental import pallas as pl
from jax.experimental.pallas import tpu as pltpu


# ----------------------------------------------------------------------------
# Generation-aware VMEM budget
# ----------------------------------------------------------------------------
def _vmem_capacity_bytes():
    try:
        cap = getattr(pltpu.get_tpu_info(), "vmem_capacity_bytes", None)
        if cap:
            return int(cap)
    except Exception:
        pass
    return 64 * 1024 * 1024  # conservative fallback = v7x per-core VMEM


# ----------------------------------------------------------------------------
# Fused path: whole 3-layer forward in one launch (everything VMEM resident)
# ----------------------------------------------------------------------------
def _gcn3_fused_kernel(adj_ref, x_ref,
                       w1_ref, b1_ref, s1_ref, t1_ref,
                       w2_ref, b2_ref, s2_ref, t2_ref,
                       w3_ref, s3_ref, t3_ref,
                       o_ref):
    adj = adj_ref[...]                                   # bf16 [N, N], reused 3x

    # ---- layer 1: propagate-first ((A @ X) @ W1), ReLU, bn1 (dropout = id) ----
    p = jnp.dot(adj, x_ref[...], preferred_element_type=jnp.float32)
    h = jnp.dot(p.astype(w1_ref.dtype), w1_ref[...],
                preferred_element_type=jnp.float32)
    h = jnp.maximum(h + b1_ref[...], 0.0) * s1_ref[...] + t1_ref[...]

    # ---- layer 2: transform-first (F1=256 > F2=128), ReLU, bn2 -------------
    h = jnp.dot(h.astype(w2_ref.dtype), w2_ref[...],
                preferred_element_type=jnp.float32)
    h = jnp.dot(adj, h.astype(adj.dtype), preferred_element_type=jnp.float32)
    h = jnp.maximum(h + b2_ref[...], 0.0) * s2_ref[...] + t2_ref[...]

    # ---- layer 3: conv3 -> bn3 (conv bias folded into BN shift, no ReLU) ----
    h = jnp.dot(h.astype(w3_ref.dtype), w3_ref[...],
                preferred_element_type=jnp.float32)
    h = jnp.dot(adj, h.astype(adj.dtype), preferred_element_type=jnp.float32)
    o_ref[...] = (h * s3_ref[...] + t3_ref[...]).astype(o_ref.dtype)


# ----------------------------------------------------------------------------
# Tiled path kernels (row-tiled grid, A_hat streamed, rest resident)
# ----------------------------------------------------------------------------
def _prop_transform_kernel(a_ref, src_ref, w_ref, b_ref, s_ref, t_ref, o_ref, *, relu):
    # out_tile = bn(act((A_tile @ src) @ W + b))   -- propagate-first layer
    p = jnp.dot(a_ref[...], src_ref[...], preferred_element_type=jnp.float32)
    h = jnp.dot(p.astype(w_ref.dtype), w_ref[...],
                preferred_element_type=jnp.float32)
    h = h + b_ref[...]
    if relu:
        h = jnp.maximum(h, 0.0)
    o_ref[...] = (h * s_ref[...] + t_ref[...]).astype(o_ref.dtype)


def _transform_kernel(h_ref, w_ref, o_ref):
    # out_tile = H_tile @ W   (feature transform, trivially row-parallel)
    o_ref[...] = jnp.dot(h_ref[...], w_ref[...],
                         preferred_element_type=jnp.float32).astype(o_ref.dtype)


def _prop_epilogue_kernel(a_ref, t_in_ref, b_ref, s_ref, t_ref, o_ref, *, relu):
    # out_tile = bn(act(A_tile @ T + b))   -- propagation of a pre-transformed T
    h = jnp.dot(a_ref[...], t_in_ref[...], preferred_element_type=jnp.float32)
    h = h + b_ref[...]
    if relu:
        h = jnp.maximum(h, 0.0)
    o_ref[...] = (h * s_ref[...] + t_ref[...]).astype(o_ref.dtype)


def _layer_prop_transform(adj_b, src_b, w_b, b2d, scale, shift, *,
                          relu, tile_m, out_dtype, vmem_limit):
    n = adj_b.shape[0]
    fin = src_b.shape[1]
    fout = w_b.shape[1]
    return pl.pallas_call(
        functools.partial(_prop_transform_kernel, relu=relu),
        out_shape=jax.ShapeDtypeStruct((n, fout), out_dtype),
        grid=(pl.cdiv(n, tile_m),),
        in_specs=[
            pl.BlockSpec((tile_m, n), lambda i: (i, 0)),    # A_hat row tile (streamed)
            pl.BlockSpec((n, fin), lambda i: (0, 0)),       # source features (resident)
            pl.BlockSpec((fin, fout), lambda i: (0, 0)),    # weight (resident)
            pl.BlockSpec((1, fout), lambda i: (0, 0)),      # conv bias
            pl.BlockSpec((1, fout), lambda i: (0, 0)),      # folded BN scale
            pl.BlockSpec((1, fout), lambda i: (0, 0)),      # folded BN shift
        ],
        out_specs=pl.BlockSpec((tile_m, fout), lambda i: (i, 0)),
        compiler_params=pltpu.CompilerParams(
            dimension_semantics=("parallel",), vmem_limit_bytes=vmem_limit),
    )(adj_b, src_b, w_b, b2d, scale, shift)


def _layer_transform(h_b, w_b, *, tile_m, vmem_limit):
    n, fin = h_b.shape
    fout = w_b.shape[1]
    return pl.pallas_call(
        _transform_kernel,
        out_shape=jax.ShapeDtypeStruct((n, fout), jnp.bfloat16),
        grid=(pl.cdiv(n, tile_m),),
        in_specs=[
            pl.BlockSpec((tile_m, fin), lambda i: (i, 0)),
            pl.BlockSpec((fin, fout), lambda i: (0, 0)),
        ],
        out_specs=pl.BlockSpec((tile_m, fout), lambda i: (i, 0)),
        compiler_params=pltpu.CompilerParams(
            dimension_semantics=("parallel",), vmem_limit_bytes=vmem_limit),
    )(h_b, w_b)


def _layer_prop_epilogue(adj_b, t_b, b2d, scale, shift, *,
                         relu, tile_m, out_dtype, vmem_limit):
    n = adj_b.shape[0]
    fout = t_b.shape[1]
    return pl.pallas_call(
        functools.partial(_prop_epilogue_kernel, relu=relu),
        out_shape=jax.ShapeDtypeStruct((n, fout), out_dtype),
        grid=(pl.cdiv(n, tile_m),),
        in_specs=[
            pl.BlockSpec((tile_m, n), lambda i: (i, 0)),    # A_hat row tile (streamed)
            pl.BlockSpec((n, fout), lambda i: (0, 0)),      # pre-transformed feats (resident)
            pl.BlockSpec((1, fout), lambda i: (0, 0)),      # conv bias
            pl.BlockSpec((1, fout), lambda i: (0, 0)),      # folded BN scale
            pl.BlockSpec((1, fout), lambda i: (0, 0)),      # folded BN shift
        ],
        out_specs=pl.BlockSpec((tile_m, fout), lambda i: (i, 0)),
        compiler_params=pltpu.CompilerParams(
            dimension_semantics=("parallel",), vmem_limit_bytes=vmem_limit),
    )(adj_b, t_b, b2d, scale, shift)


# ----------------------------------------------------------------------------
# Forward wrapper
# ----------------------------------------------------------------------------
def gcn_forward(x, adj_norm, params, *, eps=1e-5, mode="auto", tile_m=None,
                out_dtype=jnp.float32):
    """Eval-mode forward of GCN(conv1->relu->bn1->conv2->relu->bn2->conv3->bn3)."""
    n, fin = x.shape
    w1, b1, g1, bt1, m1, v1 = params["layer1"]
    w2, b2, g2, bt2, m2, v2 = params["layer2"]
    w3, b3, g3, bt3, m3, v3 = params["layer3"]
    f1, f2, f3 = w1.shape[1], w2.shape[1], w3.shape[1]

    # Fold BatchNorm running stats into per-feature scale/shift (fp32, shape (1, F)).
    def bn_fold(gamma, beta, r_mean, r_var):
        inv_std = 1.0 / jnp.sqrt(r_var + eps)
        scale = gamma * inv_std
        shift = beta - r_mean * scale
        return scale[None, :].astype(jnp.float32), shift[None, :].astype(jnp.float32)

    sc1, sh1 = bn_fold(g1, bt1, m1, v1)
    sc2, sh2 = bn_fold(g2, bt2, m2, v2)
    sc3, sh3 = bn_fold(g3, bt3, m3, v3)

    # MXU operands in bf16 (fp32 accumulation inside the kernels); epilogue stays fp32.
    adj_b = adj_norm.astype(jnp.bfloat16)
    x_b = x.astype(jnp.bfloat16)
    w1_b = w1.astype(jnp.bfloat16)
    w2_b = w2.astype(jnp.bfloat16)
    w3_b = w3.astype(jnp.bfloat16)
    b1_2d = b1[None, :].astype(jnp.float32)
    b2_2d = b2[None, :].astype(jnp.float32)
    b3_2d = b3[None, :].astype(jnp.float32)

    # Generation-aware VMEM budget (v5e/v6e: 128 MiB physical, v7x: 64 MiB).
    vmem_cap = _vmem_capacity_bytes()
    vmem_limit = int(vmem_cap * 0.85)
    fused_budget = int(vmem_cap * 0.75)

    f_max = max(fin, f1, f2, f3)
    out_bytes = jnp.dtype(out_dtype).itemsize
    fused_vmem = (2 * (n * n + n * fin + fin * f1 + f1 * f2 + f2 * f3)  # bf16 operands
                  + 4 * 7 * f_max                                       # fp32 epilogue rows
                  + out_bytes * n * f3                                  # output
                  + 4 * 4 * n * f_max)                                  # fp32 intermediates

    if mode == "auto":
        mode = "fused" if fused_vmem <= fused_budget else "tiled"

    if mode == "fused":
        sh3_f = sh3 + b3_2d * sc3   # fold conv3 bias into bn3 shift (no ReLU between)
        return pl.pallas_call(
            _gcn3_fused_kernel,
            out_shape=jax.ShapeDtypeStruct((n, f3), out_dtype),
            # No grid: full arrays staged into VMEM once; single invocation.
            compiler_params=pltpu.CompilerParams(vmem_limit_bytes=vmem_limit),
        )(adj_b, x_b, w1_b, b1_2d, sc1, sh1, w2_b, b2_2d, sc2, sh2, w3_b, sc3, sh3_f)

    # ---- tiled streaming path (large graphs / megacore) ----
    if tile_m is None:
        tile_m = 256
    tile_m = min(tile_m, n)
    if tile_m != n and tile_m % 8 != 0:
        tile_m = max(8, (tile_m // 8) * 8)

    # layer 1: propagate-first (Fin=128 < F1=256) -> ReLU -> bn1
    h1 = _layer_prop_transform(adj_b, x_b, w1_b, b1_2d, sc1, sh1,
                               relu=True, tile_m=tile_m,
                               out_dtype=jnp.bfloat16, vmem_limit=vmem_limit)
    # layer 2: transform-first (F1=256 > F2=128) -> propagate -> ReLU -> bn2
    t2 = _layer_transform(h1, w2_b, tile_m=tile_m, vmem_limit=vmem_limit)
    h2 = _layer_prop_epilogue(adj_b, t2, b2_2d, sc2, sh2,
                              relu=True, tile_m=tile_m,
                              out_dtype=jnp.bfloat16, vmem_limit=vmem_limit)
    # layer 3: transform -> propagate -> bn3 (no ReLU)
    t3 = _layer_transform(h2, w3_b, tile_m=tile_m, vmem_limit=vmem_limit)
    out = _layer_prop_epilogue(adj_b, t3, b3_2d, sc3, sh3,
                               relu=False, tile_m=tile_m,
                               out_dtype=out_dtype, vmem_limit=vmem_limit)
    return out


# ----------------------------------------------------------------------------
# Graph normalization (computed once, outside the per-forward hot path)
# ----------------------------------------------------------------------------
def normalized_adjacency(edge_index, num_nodes):
    """A_hat = D^-1/2 (A + I) D^-1/2 (PyG GCNConv symmetric normalization)."""
    src, dst = edge_index[0], edge_index[1]
    a = jnp.zeros((num_nodes, num_nodes), jnp.float32).at[src, dst].add(1.0)
    # add_remaining_self_loops: add 1.0 on the diagonal only where missing.
    eye = jnp.eye(num_nodes, dtype=bool)
    a = jnp.where(eye, jnp.maximum(a, 1.0), a)
    deg = a.sum(axis=1)
    dinv = jnp.where(deg > 0, jax.lax.rsqrt(deg), 0.0)
    return a * dinv[:, None] * dinv[None, :]


# ----------------------------------------------------------------------------
# Deterministic parameter init (shapes follow the module's __init__)
# ----------------------------------------------------------------------------
def init_layer(key, fin, fout):
    kw, kb, kg, kbt, km, kv = jax.random.split(key, 6)
    lim = 1.0 / jnp.sqrt(jnp.float32(fin))
    w = jax.random.uniform(kw, (fin, fout), jnp.float32, -lim, lim)    # GCNConv weight
    b = jax.random.uniform(kb, (fout,), jnp.float32, -lim, lim)        # GCNConv bias
    gamma = 1.0 + 0.1 * jax.random.normal(kg, (fout,), jnp.float32)    # bn weight
    beta = 0.1 * jax.random.normal(kbt, (fout,), jnp.float32)          # bn bias
    r_mean = 0.05 * jax.random.normal(km, (fout,), jnp.float32)        # bn running_mean
    r_var = 1.0 + 0.1 * jax.random.uniform(kv, (fout,), jnp.float32)   # bn running_var
    return (w, b, gamma, beta, r_mean, r_var)


if __name__ == "__main__":
    # Small node count; feature dims follow the module spec (lane-dense 128/256).
    num_nodes = 16
    input_dim = 128     # convert_to_pyg_data uses num_features = 128
    hidden_dim1 = 256
    hidden_dim2 = 128
    output_dim = 128

    key = jax.random.PRNGKey(0)
    kx, k1, k2, k3 = jax.random.split(key, 4)

    # Node features (like torch.rand node_features).
    x = jax.random.uniform(kx, (num_nodes, input_dim), jnp.float32)

    # Deterministic undirected graph: ring + chord, both directions per edge.
    src, dst = [], []
    for i in range(num_nodes):
        for j in (i + 1, i + 5):
            j = j % num_nodes
            src += [i, j]
            dst += [j, i]
    edge_index = jnp.array([src, dst], dtype=jnp.int32)   # [2, num_edges]

    params = {
        "layer1": init_layer(k1, input_dim, hidden_dim1),
        "layer2": init_layer(k2, hidden_dim1, hidden_dim2),
        "layer3": init_layer(k3, hidden_dim2, output_dim),
    }

    # Adjacency normalization is static w.r.t. the forward pass: compute it once.
    adj_norm = jax.block_until_ready(normalized_adjacency(edge_index, num_nodes))

    # Fused fast path (auto-selected for this VMEM-resident size).
    fwd_fused = jax.jit(functools.partial(gcn_forward, mode="auto"))
    out = jax.block_until_ready(fwd_fused(x, adj_norm, params))
    assert out.shape == (num_nodes, output_dim) and out.dtype == jnp.float32
    assert bool(jnp.all(jnp.isfinite(out)))

    # Also exercise the row-tiled streaming path (used when the graph exceeds
    # the fused VMEM budget); must agree with the fused path.
    fwd_tiled = jax.jit(functools.partial(gcn_forward, mode="tiled", tile_m=8))
    out_t = jax.block_until_ready(fwd_tiled(x, adj_norm, params))
    assert out_t.shape == out.shape
    assert bool(jnp.all(jnp.isfinite(out_t)))
    max_diff = float(jnp.max(jnp.abs(out - out_t)))
    assert max_diff < 5e-2, f"fused/tiled mismatch: {max_diff}"

    print("KERNEL_OK")
</pallas_src>

<mosaic_0001>
module attributes {stable_mosaic.version = 11 : i64} {
  func.func @_gcn3_fused_kernel(%arg0: memref<16x16xbf16, #tpu.memory_space<vmem>>, %arg1: memref<16x128xbf16, #tpu.memory_space<vmem>>, %arg2: memref<128x256xbf16, #tpu.memory_space<vmem>>, %arg3: memref<1x256xf32, #tpu.memory_space<vmem>>, %arg4: memref<1x256xf32, #tpu.memory_space<vmem>>, %arg5: memref<1x256xf32, #tpu.memory_space<vmem>>, %arg6: memref<256x128xbf16, #tpu.memory_space<vmem>>, %arg7: memref<1x128xf32, #tpu.memory_space<vmem>>, %arg8: memref<1x128xf32, #tpu.memory_space<vmem>>, %arg9: memref<1x128xf32, #tpu.memory_space<vmem>>, %arg10: memref<128x128xbf16, #tpu.memory_space<vmem>>, %arg11: memref<1x128xf32, #tpu.memory_space<vmem>>, %arg12: memref<1x128xf32, #tpu.memory_space<vmem>>, %arg13: memref<16x128xf32, #tpu.memory_space<vmem>>) attributes {dimension_semantics = [], scalar_prefetch = 0 : i64, scratch_operands = 0 : i64, tpu.core_type = #tpu.core_type<tc>} {
    %c0 = arith.constant 0 : index
    %c0_0 = arith.constant 0 : index
    %0 = vector.load %arg0[%c0, %c0_0] : memref<16x16xbf16, #tpu.memory_space<vmem>>, vector<16x16xbf16>
    %c0_1 = arith.constant 0 : index
    %c0_2 = arith.constant 0 : index
    %1 = vector.load %arg1[%c0_1, %c0_2] : memref<16x128xbf16, #tpu.memory_space<vmem>>, vector<16x128xbf16>
    %cst = arith.constant dense<0.000000e+00> : vector<16x128xf32>
    %2 = tpu.matmul %0, %1, %cst {dimension_numbers = #tpu.dot_dimension_numbers<[1], [0], [0], [1], [0, 0, 1, 1], [], []>} : vector<16x16xbf16>, vector<16x128xbf16>, vector<16x128xf32> -> vector<16x128xf32>
    %3 = arith.truncf %2 : vector<16x128xf32> to vector<16x128xbf16>
    %c0_3 = arith.constant 0 : index
    %c0_4 = arith.constant 0 : index
    %4 = vector.load %arg2[%c0_3, %c0_4] : memref<128x256xbf16, #tpu.memory_space<vmem>>, vector<128x256xbf16>
    %cst_5 = arith.constant dense<0.000000e+00> : vector<16x256xf32>
    %5 = tpu.matmul %3, %4, %cst_5 {dimension_numbers = #tpu.dot_dimension_numbers<[1], [0], [0], [1], [0, 0, 1, 1], [], []>} : vector<16x128xbf16>, vector<128x256xbf16>, vector<16x256xf32> -> vector<16x256xf32>
    %c0_6 = arith.constant 0 : index
    %c0_7 = arith.constant 0 : index
    %6 = vector.load %arg3[%c0_6, %c0_7] : memref<1x256xf32, #tpu.memory_space<vmem>>, vector<1x256xf32>
    %7 = vector.broadcast %6 : vector<1x256xf32> to vector<16x256xf32>
    %8 = arith.addf %5, %7 : vector<16x256xf32>
    %cst_8 = arith.constant 0.000000e+00 : f32
    %9 = vector.broadcast %cst_8 : f32 to vector<16x256xf32>
    %10 = arith.maximumf %8, %9 : vector<16x256xf32>
    %c0_9 = arith.constant 0 : index
    %c0_10 = arith.constant 0 : index
    %11 = vector.load %arg4[%c0_9, %c0_10] : memref<1x256xf32, #tpu.memory_space<vmem>>, vector<1x256xf32>
    %12 = vector.broadcast %11 : vector<1x256xf32> to vector<16x256xf32>
    %13 = arith.mulf %10, %12 : vector<16x256xf32>
    %c0_11 = arith.constant 0 : index
    %c0_12 = arith.constant 0 : index
    %14 = vector.load %arg5[%c0_11, %c0_12] : memref<1x256xf32, #tpu.memory_space<vmem>>, vector<1x256xf32>
    %15 = vector.broadcast %14 : vector<1x256xf32> to vector<16x256xf32>
    %16 = arith.addf %13, %15 : vector<16x256xf32>
    %17 = arith.truncf %16 : vector<16x256xf32> to vector<16x256xbf16>
    %c0_13 = arith.constant 0 : index
    %c0_14 = arith.constant 0 : index
    %18 = vector.load %arg6[%c0_13, %c0_14] : memref<256x128xbf16, #tpu.memory_space<vmem>>, vector<256x128xbf16>
    %cst_15 = arith.constant dense<0.000000e+00> : vector<16x128xf32>
    %19 = tpu.matmul %17, %18, %cst_15 {dimension_numbers = #tpu.dot_dimension_numbers<[1], [0], [0], [1], [0, 0, 1, 1], [], []>} : vector<16x256xbf16>, vector<256x128xbf16>, vector<16x128xf32> -> vector<16x128xf32>
    %20 = arith.truncf %19 : vector<16x128xf32> to vector<16x128xbf16>
    %cst_16 = arith.constant dense<0.000000e+00> : vector<16x128xf32>
    %21 = tpu.matmul %0, %20, %cst_16 {dimension_numbers = #tpu.dot_dimension_numbers<[1], [0], [0], [1], [0, 0, 1, 1], [], []>} : vector<16x16xbf16>, vector<16x128xbf16>, vector<16x128xf32> -> vector<16x128xf32>
    %c0_17 = arith.constant 0 : index
    %c0_18 = arith.constant 0 : index
    %22 = vector.load %arg7[%c0_17, %c0_18] : memref<1x128xf32, #tpu.memory_space<vmem>>, vector<1x128xf32>
    %23 = vector.broadcast %22 : vector<1x128xf32> to vector<16x128xf32>
    %24 = arith.addf %21, %23 : vector<16x128xf32>
    %cst_19 = arith.constant 0.000000e+00 : f32
    %25 = vector.broadcast %cst_19 : f32 to vector<16x128xf32>
    %26 = arith.maximumf %24, %25 : vector<16x128xf32>
    %c0_20 = arith.constant 0 : index
    %c0_21 = arith.constant 0 : index
    %27 = vector.load %arg8[%c0_20, %c0_21] : memref<1x128xf32, #tpu.memory_space<vmem>>, vector<1x128xf32>
    %28 = vector.broadcast %27 : vector<1x128xf32> to vector<16x128xf32>
    %29 = arith.mulf %26, %28 : vector<16x128xf32>
    %c0_22 = arith.constant 0 : index
    %c0_23 = arith.constant 0 : index
    %30 = vector.load %arg9[%c0_22, %c0_23] : memref<1x128xf32, #tpu.memory_space<vmem>>, vector<1x128xf32>
    %31 = vector.broadcast %30 : vector<1x128xf32> to vector<16x128xf32>
    %32 = arith.addf %29, %31 : vector<16x128xf32>
    %33 = arith.truncf %32 : vector<16x128xf32> to vector<16x128xbf16>
    %c0_24 = arith.constant 0 : index
    %c0_25 = arith.constant 0 : index
    %34 = vector.load %arg10[%c0_24, %c0_25] : memref<128x128xbf16, #tpu.memory_space<vmem>>, vector<128x128xbf16>
    %cst_26 = arith.constant dense<0.000000e+00> : vector<16x128xf32>
    %35 = tpu.matmul %33, %34, %cst_26 {dimension_numbers = #tpu.dot_dimension_numbers<[1], [0], [0], [1], [0, 0, 1, 1], [], []>} : vector<16x128xbf16>, vector<128x128xbf16>, vector<16x128xf32> -> vector<16x128xf32>
    %36 = arith.truncf %35 : vector<16x128xf32> to vector<16x128xbf16>
    %cst_27 = arith.constant dense<0.000000e+00> : vector<16x128xf32>
    %37 = tpu.matmul %0, %36, %cst_27 {dimension_numbers = #tpu.dot_dimension_numbers<[1], [0], [0], [1], [0, 0, 1, 1], [], []>} : vector<16x16xbf16>, vector<16x128xbf16>, vector<16x128xf32> -> vector<16x128xf32>
    %c0_28 = arith.constant 0 : index
    %c0_29 = arith.constant 0 : index
    %38 = vector.load %arg11[%c0_28, %c0_29] : memref<1x128xf32, #tpu.memory_space<vmem>>, vector<1x128xf32>
    %39 = vector.broadcast %38 : vector<1x128xf32> to vector<16x128xf32>
    %40 = arith.mulf %37, %39 : vector<16x128xf32>
    %c0_30 = arith.constant 0 : index
    %c0_31 = arith.constant 0 : index
    %41 = vector.load %arg12[%c0_30, %c0_31] : memref<1x128xf32, #tpu.memory_space<vmem>>, vector<1x128xf32>
    %42 = vector.broadcast %41 : vector<1x128xf32> to vector<16x128xf32>
    %43 = arith.addf %40, %42 : vector<16x128xf32>
    %c0_32 = arith.constant 0 : index
    %c0_33 = arith.constant 0 : index
    %44 = vector.load %arg13[%c0_32, %c0_33] : memref<16x128xf32, #tpu.memory_space<vmem>>, vector<16x128xf32>
    tpu.vector_store %arg13[%c0_32, %c0_33], %43 {strides = array<i32>} : memref<16x128xf32, #tpu.memory_space<vmem>>, vector<16x128xf32>,
    return
  }
}

</mosaic_0001>

<bundles_post_ra>
// kernel: gcn_forward.1
= control target key start
LH: loop header
LB: loop body
LE: loop exit
PB: predicated region body
PF: predicated region fallthrough
CT: control target
= control target key end

     0   :  { %vm61_vm0 = vcmask 130048   ;;  %s1080_s0 = inlined_call_operand.vmem [shape: bf16[16,16], index: 0, kind: input, shape index: {}]   ;;  %s1081_s1 = inlined_call_operand.vmem [shape: bf16[16,128], index: 1, kind: input, shape index: {}]   ;;  %s1082_s2 = inlined_call_operand.vmem [shape: bf16[128,256], index: 2, kind: input, shape index: {}]   ;;  %s1083_s3 = inlined_call_operand.vmem [shape: f32[1,256], index: 3, kind: input, shape index: {}]   ;;  %s1084_s4 = inlined_call_operand.vmem [shape: f32[1,256], index: 4, kind: input, shape index: {}]   ;;  %s1085_s5 = inlined_call_operand.vmem [shape: f32[1,256], index: 5, kind: input, shape index: {}]   ;;  %s1086_s6 = inlined_call_operand.vmem [shape: bf16[256,128], index: 6, kind: input, shape index: {}]   ;;  %s1087_s7 = inlined_call_operand.vmem [shape: f32[1,128], index: 7, kind: input, shape index: {}]   ;;  %s1088_s8 = inlined_call_operand.vmem [shape: f32[1,128], index: 8, kind: input, shape index: {}]   ;;  %s1089_s9 = inlined_call_operand.vmem [shape: f32[1,128], index: 9, kind: input, shape index: {}]   ;;  %s1090_s10 = inlined_call_operand.vmem [shape: bf16[128,128], index: 10, kind: input, shape index: {}]   ;;  %s1091_s11 = inlined_call_operand.vmem [shape: f32[1,128], index: 11, kind: input, shape index: {}]   ;;  %s1092_s12 = inlined_call_operand.vmem [shape: f32[1,128], index: 12, kind: input, shape index: {}]   ;;  %s1093_s13 = inlined_call_operand.hbm [shape: f32[16,128], index: 13, kind: output, shape index: {}]  }
   0x1   :  { %v723_v0 = vld [vmem:[%s1081_s1] sm:$0xff]  ;;  %v618_v2 = vld [vmem:[%s1082_s2 + $0x70] sm:$0xf]  ;;  %v739_v3 = vld [vmem:[%s1082_s2 + $0x74] sm:$0xf0] }
   0x2   :  { %v877_v1 = vld [vmem:[%s1080_s0] sm:$0xff]  ;;  %v738_v4 = vld [vmem:[%s1082_s2 + $0x74] sm:$0xf]  ;;  %v620_v5 = vld [vmem:[%s1082_s2 + $0x78] sm:$0xf0]  ;;  %72 = vmatpush.bf16.msra.mxu0 %v723_v0  ;;  %v619_v6 = vor.u32 %v739_v3, %v618_v2 }
   0x3   :  { %v623_v7 = vor.u32 %v738_v4, %v620_v5  ;;  %v610_v8 = vld [vmem:[%s1082_s2 + $0x60] sm:$0xf]  ;;  %v737_v9 = vld [vmem:[%s1082_s2 + $0x64] sm:$0xf0]  ;;  %v736_v10 = vld [vmem:[%s1082_s2 + $0x64] sm:$0xf] }
   0x4   :  { %v612_v11 = vld [vmem:[%s1082_s2 + $0x68] sm:$0xf0]  ;;  %182 = vmatpush.bf16.msra.mxu1 %v619_v6  ;;  %v611_v12 = vor.u32 %v737_v9, %v610_v8  ;;  %v602_v14 = vld [vmem:[%s1082_s2 + $0x50] sm:$0xf]  ;;  %v735_v15 = vld [vmem:[%s1082_s2 + $0x54] sm:$0xf0] }
   0x5   :  { %196 = vmatpush.bf16.msra.mxu2 %v623_v7  ;;  %v615_v13 = vor.u32 %v736_v10, %v612_v11  ;;  %559 = vmatmul.msk.bf16.vlgmr.msra.gmra.mxu0 %vm61_vm0, %v877_v1  ;;  %v734_v16 = vld [vmem:[%s1082_s2 + $0x54] sm:$0xf]  ;;  %v604_v17 = vld [vmem:[%s1082_s2 + $0x58] sm:$0xf0]  ;;  %v594_v18 = vld [vmem:[%s1082_s2 + $0x40] sm:$0xf]  ;;  %v603_v20 = vor.u32 %v735_v15, %v602_v14 }
   0x6   :  { %v733_v19 = vld [vmem:[%s1082_s2 + $0x44] sm:$0xf0]  ;;  %v607_v21 = vor.u32 %v734_v16, %v604_v17  ;;  %v732_v22 = vld [vmem:[%s1082_s2 + $0x44] sm:$0xf]  ;;  %v596_v23 = vld [vmem:[%s1082_s2 + $0x48] sm:$0xf0] }
   0x8   :  { %183 = vmatpush.bf16.msra.mxu1 %v611_v12 }
   0x9   :  { %197 = vmatpush.bf16.msra.mxu2 %v615_v13 }
   0xa   :  { %18 = vsyncpa [#allocation3], 0  ;;  %v595_v24 = vor.u32 %v733_v19, %v594_v18  ;;  %v599_v25 = vor.u32 %v732_v22, %v596_v23  ;;  %v586_v26 = vld [vmem:[%s1082_s2 + $0x30] sm:$0xf]  ;;  %v731_v27 = vld [vmem:[%s1082_s2 + $0x34] sm:$0xf0] }
   0xb   :  { %v730_v28 = vld [vmem:[%s1082_s2 + $0x34] sm:$0xf]  ;;  %v588_v29 = vld [vmem:[%s1082_s2 + $0x38] sm:$0xf0]  ;;  %v587_v30 = vor.u32 %v731_v27, %v586_v26  ;;  %v578_v32 = vld [vmem:[%s1082_s2 + $0x20] sm:$0xf] }
   0xc   :  { %184 = vmatpush.bf16.msra.mxu1 %v603_v20  ;;  %v591_v31 = vor.u32 %v730_v28, %v588_v29  ;;  %v729_v33 = vld [vmem:[%s1082_s2 + $0x24] sm:$0xf0]  ;;  %v728_v34 = vld [vmem:[%s1082_s2 + $0x24] sm:$0xf]  ;;  %v580_v36 = vld [vmem:[%s1082_s2 + $0x28] sm:$0xf0] }
   0xd   :  { %198 = vmatpush.bf16.msra.mxu2 %v607_v21  ;;  %v579_v35 = vor.u32 %v729_v33, %v578_v32  ;;  %v583_v37 = vor.u32 %v728_v34, %v580_v36  ;;  %v570_v38 = vld [vmem:[%s1082_s2 + $0x10] sm:$0xf]  ;;  %v727_v39 = vld [vmem:[%s1082_s2 + $0x14] sm:$0xf0]  ;;  %v726_v40 = vld [vmem:[%s1082_s2 + $0x14] sm:$0xf] }
   0xe   :  { %v571_v41 = vor.u32 %v727_v39, %v570_v38  ;;  %v572_v42 = vld [vmem:[%s1082_s2 + $0x18] sm:$0xf0]  ;;  %v562_v44 = vld [vmem:[%s1082_s2] sm:$0xf]  ;;  %v725_v45 = vld [vmem:[%s1082_s2 + $0x4] sm:$0xf0] }
   0xf   :  { %v575_v43 = vor.u32 %v726_v40, %v572_v42  ;;  %v724_v46 = vld [vmem:[%s1082_s2 + $0x4] sm:$0xf]  ;;  %v563_v47 = vor.u32 %v725_v45, %v562_v44  ;;  %v564_v48 = vld [vmem:[%s1082_s2 + $0x8] sm:$0xf0]  ;;  %v747_v50 = vld [vmem:[%s1086_s6 + $0x38] sm:$0xff] }
  0x10   :  { %185 = vmatpush.bf16.msra.mxu1 %v595_v24  ;;  %v567_v49 = vor.u32 %v724_v46, %v564_v48  ;;  %v755_v51 = vld [vmem:[%s1086_s6 + $0x78] sm:$0xff]  ;;  %364 = vmatpush.bf16.msra.mxu3 %v747_v50  ;;  %v746_v52 = vld [vmem:[%s1086_s6 + $0x30] sm:$0xff]  ;;  %v745_v54 = vld [vmem:[%s1086_s6 + $0x28] sm:$0xff] }
  0x11   :  { %199 = vmatpush.bf16.msra.mxu2 %v599_v25  ;;  %378 = vmatpush.bf16.msrb.mxu0 %v755_v51  ;;  %v754_v53 = vld [vmem:[%s1086_s6 + $0x70] sm:$0xff]  ;;  %v744_v58 = vld [vmem:[%s1086_s6 + $0x20] sm:$0xff]  ;;  %v753_v59 = vld [vmem:[%s1086_s6 + $0x68] sm:$0xff] }
  0x12   :  { %v743_v60 = vld [vmem:[%s1086_s6 + $0x18] sm:$0xff]  ;;  %v752_v61 = vld [vmem:[%s1086_s6 + $0x60] sm:$0xff]  ;;  %v742_v62 = vld [vmem:[%s1086_s6 + $0x10] sm:$0xff] }
  0x13   :  { %v751_v63 = vld [vmem:[%s1086_s6 + $0x58] sm:$0xff]  ;;  %v741_v0 = vld [vmem:[%s1086_s6 + $0x8] sm:$0xff]  ;;  %v750_v2 = vld [vmem:[%s1086_s6 + $0x50] sm:$0xff] }
  0x14   :  { %186 = vmatpush.bf16.msra.mxu1 %v587_v30  ;;  %365 = vmatpush.bf16.msra.mxu3 %v746_v52  ;;  %v740_v3 = vld [vmem:[%s1086_s6] sm:$0xff]  ;;  %v749_v4 = vld [vmem:[%s1086_s6 + $0x48] sm:$0xff]  ;;  %v762_v38 = vld [vmem:[%s1090_s10 + $0x30] sm:$0xff] }
  0x15   :  { %200 = vmatpush.bf16.msra.mxu2 %v591_v31  ;;  %379 = vmatpush.bf16.msrb.mxu0 %v754_v53  ;;  %v748_v5 = vld [vmem:[%s1086_s6 + $0x40] sm:$0xff]  ;;  %v761_v39 = vld [vmem:[%s1090_s10 + $0x28] sm:$0xff]  ;;  %v759_v48 = vld [vmem:[%s1090_s10 + $0x18] sm:$0xff]  ;;  %s800_s6 = smov 8  }
  0x16   :  { %v96_v6 = vld [vmem:[%s1083_s3] sm:$0x3]  ;;  %v757_v50 = vld [vmem:[%s1090_s10 + $0x8] sm:$0xff] }
  0x17   :  { %v98_v7 = vperm.slane %v96_v6, 0  ;;  %v214_v10 = vld [vmem:[%s1084_s4] sm:$0x3]  ;;  %v99_v11 = vperm.slane %v96_v6, 1 }
  0x18   :  { %187 = vmatpush.bf16.msra.mxu1 %v579_v35  ;;  %366 = vmatpush.bf16.msra.mxu3 %v745_v54  ;;  %v216_v14 = vperm.slane %v214_v10, 0  ;;  %v224_v15 = vld [vmem:[%s1085_s5] sm:$0x3]  ;;  %v217_v23 = vperm.slane %v214_v10, 1  ;;  %s539_s5 = sshll.u32 %s1093_s13, 4  ;;  %s540_s5 = int_to_ptr.hbm [resolvable:$true] %s539_s5 }
  0x19   :  { %201 = vmatpush.bf16.msra.mxu2 %v583_v37  ;;  %380 = vmatpush.bf16.msrb.mxu0 %v753_v59  ;;  %v226_v21 = vperm.slane %v224_v15, 0  ;;  %v227_v30 = vperm.slane %v224_v15, 1  ;;  %v763_v37 = vld [vmem:[%s1090_s10 + $0x38] sm:$0xff]  ;;  %v756_v51 = vld [vmem:[%s1090_s10] sm:$0xff] }
  0x1a   :  { %v767_v52 = vld [vmem:[%s1087_s7] ss:$0 sm:$0xff] }
  0x1b   :  { %v770_v6 = vld [vmem:[%s1091_s11] ss:$0 sm:$0xff]  ;;  %s799_s11 = smov 128  }
  0x1c   :  { %188 = vmatpush.bf16.msra.mxu1 %v571_v41  ;;  %367 = vmatpush.bf16.msra.mxu3 %v744_v58 }
  0x1d   :  { %202 = vmatpush.bf16.msra.mxu2 %v575_v43  ;;  %381 = vmatpush.bf16.msrb.mxu0 %v752_v61 }
  0x20   :  { %189 = vmatpush.bf16.msra.mxu1 %v563_v47  ;;  %368 = vmatpush.bf16.msra.mxu3 %v743_v60  ;;  %v760_v47 = vld [vmem:[%s1090_s10 + $0x20] sm:$0xff] }
  0x21   :  { %203 = vmatpush.bf16.msra.mxu2 %v567_v49  ;;  %382 = vmatpush.bf16.msrb.mxu0 %v751_v63  ;;  %v758_v49 = vld [vmem:[%s1090_s10 + $0x10] sm:$0xff]  ;;  %v769_v60 = vld [vmem:[%s1089_s9] ss:$0 sm:$0xff]  ;;  %s798_s9 = smov [#allocation2]  }
  0x22   :  { %s537_s16 = sshll.u32 %s798_s9, 4  ;;  %s538_s16 = int_to_ptr.vmem [resolvable:$true] %s537_s16 }
  0x24   :  { %369 = vmatpush.bf16.msra.mxu3 %v742_v62 }
  0x25   :  { %383 = vmatpush.bf16.msrb.mxu0 %v750_v2  ;;  %490 = vmatpush.bf16.msrb.mxu2 %v763_v37 }
  0x28   :  { %370 = vmatpush.bf16.msra.mxu3 %v741_v0 }
  0x29   :  { %384 = vmatpush.bf16.msrb.mxu0 %v749_v4  ;;  %491 = vmatpush.bf16.msrb.mxu2 %v762_v38 }
  0x2c   :  { %371 = vmatpush.bf16.msra.mxu3 %v740_v3 }
  0x2d   :  { %385 = vmatpush.bf16.msrb.mxu0 %v748_v5  ;;  %492 = vmatpush.bf16.msrb.mxu2 %v761_v39 }
  0x31   :  { %493 = vmatpush.bf16.msrb.mxu2 %v760_v47 }
  0x35   :  { %494 = vmatpush.bf16.msrb.mxu2 %v759_v48 }
  0x39   :  { %495 = vmatpush.bf16.msrb.mxu2 %v758_v49 }
  0x3d   :  { %496 = vmatpush.bf16.msrb.mxu2 %v757_v50 }
  0x41   :  { %497 = vmatpush.bf16.msrb.mxu2 %v756_v51 }
  0x82   :  { %v74_v55 = vpop.f32.mrf.mxu0 }
  0x8a   :  { %v76_v56 = vpop.f32.mrf.mxu0 }
  0x8b   :  { %v79_v57 = vpack.c.bf16 %v76_v56, %v74_v55  ;;  %v768_v56 = vld [vmem:[%s1088_s8] ss:$0 sm:$0xff] }
  0x8d   :  { %190 = vmatmul.bf16.vlgmr.msra.gmra.mxu1 %v79_v57  ;;  %204 = vmatmul.bf16.vlgmr.msra.gmra.mxu2 %v79_v57 }
 0x10a   :  { %v191_v8 = vpop.f32.mrf.mxu1 }
 0x10b   :  { %v192_v9 = vadd.f32 %v191_v8, %v98_v7 }
 0x10d   :  { %v210_v13 = vmax.f32 %v192_v9, 0.0 }
 0x10f   :  { %v220_v19 = vmul.f32 %v216_v14, %v210_v13 }
 0x110   :  { %v205_v12 = vpop.f32.mrf.mxu2 }
 0x111   :  { %v206_v17 = vadd.f32 %v205_v12, %v99_v11  ;;  %v230_v27 = vadd.f32 %v226_v21, %v220_v19 }
 0x112   :  { %v193_v16 = vpop.f32.mrf.mxu1 }
 0x113   :  { %v194_v18 = vadd.f32 %v193_v16, %v98_v7  ;;  %v211_v22 = vmax.f32 %v206_v17, 0.0  ;;  %v771_v7 = vld [vmem:[%s1092_s12] ss:$0 sm:$0xff] }
 0x115   :  { %v212_v20 = vmax.f32 %v194_v18, 0.0  ;;  %v221_v29 = vmul.f32 %v217_v23, %v211_v22 }
 0x117   :  { %v222_v24 = vmul.f32 %v216_v14, %v212_v20  ;;  %v231_v34 = vadd.f32 %v227_v30, %v221_v29 }
 0x118   :  { %v207_v25 = vpop.f32.mrf.mxu2 }
 0x119   :  { %v208_v26 = vadd.f32 %v207_v25, %v99_v11  ;;  %v232_v28 = vadd.f32 %v226_v21, %v222_v24 }
 0x11b   :  { %v213_v31 = vmax.f32 %v208_v26, 0.0  ;;  %v234_v32 = vpack.c.bf16 %v232_v28, %v230_v27 }
 0x11d   :  { %v223_v33 = vmul.f32 %v217_v23, %v213_v31  ;;  %372 = vmatmul.bf16.vlgmr.msra.gmra.mxu3 %v234_v32 }
 0x11f   :  { %v233_v35 = vadd.f32 %v227_v30, %v223_v33 }
 0x121   :  { %v235_v36 = vpack.c.bf16 %v233_v35, %v231_v34 }
 0x123   :  { %386 = vmatmul.bf16.vlgmr.msrb.gmra.mxu0 %v235_v36 }
 0x1a0   :  { %v373_v40 = vpop.f32.mrf.mxu3  ;;  %v387_v41 = vpop.f32.mrf.mxu0 }
 0x1a1   :  { %v388_v44 = vadd.f32 %v387_v41, %v373_v40 }
 0x1a8   :  { %v375_v42 = vpop.f32.mrf.mxu3  ;;  %v389_v43 = vpop.f32.mrf.mxu0 }
 0x1a9   :  { %v390_v45 = vadd.f32 %v389_v43, %v375_v42 }
 0x1ab   :  { %v392_v46 = vpack.c.bf16 %v390_v45, %v388_v44 }
 0x1ad   :  { %404 = vmatpush.bf16.msrb.mxu1 %v392_v46 }
 0x1b0   :  { %688 = vmatmul.msk.bf16.vlgmr.msrb.gmra.mxu1 %vm61_vm0, %v877_v1 }
 0x22d   :  { %v406_v53 = vpop.f32.mrf.mxu1 }
 0x22e   :  { %v407_v54 = vadd.f32 %v767_v52, %v406_v53 }
 0x230   :  { %v411_v55 = vmax.f32 %v407_v54, 0.0 }
 0x232   :  { %v417_v59 = vmul.f32 %v768_v56, %v411_v55 }
 0x234   :  { %v423_v63 = vadd.f32 %v769_v60, %v417_v59 }
 0x235   :  { %v408_v57 = vpop.f32.mrf.mxu1 }
 0x236   :  { %v409_v58 = vadd.f32 %v767_v52, %v408_v57 }
 0x238   :  { %v412_v61 = vmax.f32 %v409_v58, 0.0 }
 0x23a   :  { %v418_v62 = vmul.f32 %v768_v56, %v412_v61 }
 0x23c   :  { %v424_v0 = vadd.f32 %v769_v60, %v418_v62 }
 0x23e   :  { %v425_v2 = vpack.c.bf16 %v424_v0, %v423_v63 }
 0x240   :  { %498 = vmatmul.bf16.vlgmr.msrb.gmra.mxu2 %v425_v2 }
 0x2c3   :  { %v499_v3 = vpop.f32.mrf.mxu2 }
 0x2cb   :  { %v501_v4 = vpop.f32.mrf.mxu2 }
 0x2cc   :  { %v504_v5 = vpack.c.bf16 %v501_v4, %v499_v3 }
 0x2ce   :  { %512 = vmatpush.bf16.msrb.mxu3 %v504_v5 }
 0x2d1   :  { %721 = vmatmul.msk.bf16.vlgmr.msrb.gmra.mxu3 %vm61_vm0, %v877_v1 }
 0x354   :  { %v514_v8 = vpop.f32.mrf.mxu3 }
 0x355   :  { %v523_v9 = vmul.f32 %v770_v6, %v514_v8 }
 0x357   :  { %v529_v10 = vadd.f32 %v771_v7, %v523_v9 }
 0x359   :  { %531 = vst [vmem:[#allocation2] sm:$0xff] %v529_v10 }
 0x35c   :  { %v516_v11 = vpop.f32.mrf.mxu3 }
 0x35d   :  { %v524_v1 = vmul.f32 %v770_v6, %v516_v11 }
 0x35f   :  { %v530_v12 = vadd.f32 %v771_v7, %v524_v1 }
 0x361   :  { %532 = vst [vmem:[#allocation2 + $0x8] sm:$0xff] %v530_v12 }
 0x362   :  { %545 = dma.vmem_to_hbm [thread:$0]  %s538_s16, 256, %s540_s5, [#allocation3], %s799_s11, %s799_s11, %s800_s6  }
 0x363   :  { %796 = dma.done.wait [#allocation3], 256  }
 0x364   :  { %797 = vsyncadd [#allocation3], 4294967040 }
 0x365   :  { %550 = vsyncpa [#allocation3], 1 }

</bundles_post_ra>
